<compile_context>
chip_gen: v7x
topology: tpu7x:2x2x1
jax: 0.10.0
libtpu: 0.0.40
codegen_flags: <defaults>
</compile_context>

<pallas_src>
import functools

import jax
import jax.numpy as jnp
import numpy as np
from jax import lax
from jax.experimental import pallas as pl
from jax.experimental.pallas import tpu as pltpu


# ---------------------------------------------------------------------------
# Kernel: grid = (row_tiles, k_tiles); k (contraction) axis last, "arbitrary".
# ---------------------------------------------------------------------------
def _mctct_output_kernel(x_ref, w_ref, res_ref, gamma_ref, beta_ref, o_ref,
                         *scratch, eps):
    # If the output is f32 we accumulate straight into the resident output
    # block; otherwise an f32 VMEM scratch accumulator is supplied.
    acc_ref = scratch[0] if scratch else o_ref

    k = pl.program_id(1)
    nk = pl.num_programs(1)

    @pl.when(k == 0)
    def _():
        acc_ref[...] = jnp.zeros_like(acc_ref)

    # Partial product for this K slice: bf16 inputs, f32 accumulation on MXU.
    acc_ref[...] += jnp.dot(x_ref[...], w_ref[...],
                            preferred_element_type=jnp.float32)

    @pl.when(k == nk - 1)
    def _():
        # dropout == identity (eval mode)
        h = acc_ref[...].astype(jnp.float32) + res_ref[...].astype(jnp.float32)
        mean = jnp.mean(h, axis=-1, keepdims=True)
        centered = h - mean
        var = jnp.mean(centered * centered, axis=-1, keepdims=True)
        inv = lax.rsqrt(var + eps)                      # EUP slot
        y = centered * inv * gamma_ref[...] + beta_ref[...]
        o_ref[...] = y.astype(o_ref.dtype)


# ---------------------------------------------------------------------------
# Tile selection / VMEM budgeting
# ---------------------------------------------------------------------------
def _round_up(x, m):
    return ((x + m - 1) // m) * m


def _vmem_capacity_bytes():
    try:
        info = pltpu.get_tpu_info()
        cap = getattr(info, "vmem_capacity_bytes", None)
        if cap:
            return int(cap)
    except Exception:
        pass
    return 64 * 1024 * 1024  # v7x-safe default


def _bytes_needed(tm, tk, n, cdt, odt, use_scratch):
    pad_n = max(n, 128)                       # lane padding of the N axis
    b = 2 * tm * tk * cdt                     # x tile, double-buffered
    b += 2 * tk * pad_n * cdt                 # weight slice, double-buffered
    b += 2 * tm * pad_n * cdt                 # residual tile
    b += 2 * tm * pad_n * odt                 # output tile
    b += 2 * 2 * 8 * pad_n * 4                # gamma / beta (sublane-padded)
    if use_scratch:
        b += tm * pad_n * 4                   # f32 accumulator
    return b


def _select_tiles(m, k, n, cdt, odt, use_scratch, budget):
    """Pick (TM, TK, bytes). Prefer large TM; within a TM prefer TK=K
    (weight-resident -> weight DMA'd once), else stream a K divisor."""
    m_cap = _round_up(m, 8)
    tms = []
    for t in (1024, 512, 256, 128, 64, 32, 16, 8):
        t = min(t, m_cap)
        if t not in tms:
            tms.append(t)
    tks = [k] + [t for t in (2048, 1024, 512, 256, 128) if t < k and k % t == 0]

    best = None
    for tm in tms:
        for tk in tks:
            need = _bytes_needed(tm, tk, n, cdt, odt, use_scratch)
            if best is None or need < best[2]:
                best = (tm, tk, need)
            if need <= budget:
                return tm, tk, need
    return best  # nothing fit the budget: smallest footprint found (still correct)


# ---------------------------------------------------------------------------
# Wrapper
# ---------------------------------------------------------------------------
def mctct_output(hidden_states, w_dense, gamma, beta, input_tensor,
                 *, eps=1e-5, compute_dtype=jnp.bfloat16):
    B, S, K = hidden_states.shape
    N = input_tensor.shape[-1]
    assert w_dense.shape == (K, N)

    out_dtype = hidden_states.dtype
    M = B * S

    # Cast the matmul path ONCE in the wrapper (halves HBM traffic, native MXU
    # bf16 rate); LayerNorm params stay f32.
    x2d = hidden_states.reshape(M, K).astype(compute_dtype)
    w = w_dense.astype(compute_dtype)
    res2d = input_tensor.reshape(M, N).astype(compute_dtype)
    gamma2d = gamma.reshape(1, N).astype(jnp.float32)
    beta2d = beta.reshape(1, N).astype(jnp.float32)

    use_scratch = (jnp.dtype(out_dtype) != jnp.dtype(jnp.float32))
    cdt = jnp.dtype(compute_dtype).itemsize
    odt = jnp.dtype(out_dtype).itemsize

    vmem_cap = _vmem_capacity_bytes()
    budget = int(vmem_cap * 0.75)
    TM, TK, need = _select_tiles(M, K, N, cdt, odt, use_scratch, budget)

    row_tiles = pl.cdiv(M, TM)
    k_tiles = pl.cdiv(K, TK)
    grid = (row_tiles, k_tiles)

    kernel = functools.partial(_mctct_output_kernel, eps=float(eps))

    # Weight HBM traffic: fetched once if resident (k_tiles == 1, constant
    # block index across the whole grid), else re-streamed per row tile.
    w_bytes = K * N * cdt * (1 if k_tiles == 1 else row_tiles)
    cost = pl.CostEstimate(
        flops=2 * M * K * N + 10 * M * N,
        transcendentals=M,  # one rsqrt per row
        bytes_accessed=int(M * K * cdt + w_bytes + M * N * cdt
                           + M * N * odt + 2 * N * 4),
    )

    vmem_limit = int(min(max(need + (8 << 20), 8 << 20), vmem_cap))

    scratch_shapes = ([pltpu.VMEM((TM, N), jnp.float32)] if use_scratch else [])

    out2d = pl.pallas_call(
        kernel,
        out_shape=jax.ShapeDtypeStruct((M, N), out_dtype),
        grid_spec=pltpu.PrefetchScalarGridSpec(
            num_scalar_prefetch=0,
            grid=grid,
            in_specs=[
                pl.BlockSpec((TM, TK), lambda i, k: (i, k)),   # x tile
                pl.BlockSpec((TK, N), lambda i, k: (k, 0)),    # weight slice
                pl.BlockSpec((TM, N), lambda i, k: (i, 0)),    # residual tile
                pl.BlockSpec((1, N), lambda i, k: (0, 0)),     # gamma
                pl.BlockSpec((1, N), lambda i, k: (0, 0)),     # beta
            ],
            out_specs=pl.BlockSpec((TM, N), lambda i, k: (i, 0)),
            scratch_shapes=scratch_shapes,
        ),
        compiler_params=pltpu.CompilerParams(
            dimension_semantics=("parallel", "arbitrary"),
            vmem_limit_bytes=vmem_limit,
        ),
        cost_estimate=cost,
    )(x2d, w, res2d, gamma2d, beta2d)

    return out2d.reshape(B, S, N)


# ---------------------------------------------------------------------------
# Pure-JAX reference (same bf16-in / f32-accumulate numerics as the kernel)
# ---------------------------------------------------------------------------
def _reference_forward(hidden_states, w_dense, gamma, beta, input_tensor, eps,
                       compute_dtype=jnp.bfloat16):
    x = hidden_states.astype(compute_dtype)
    w = w_dense.astype(compute_dtype)
    r = input_tensor.astype(compute_dtype)
    h = jnp.einsum('bsk,kn->bsn', x, w, preferred_element_type=jnp.float32)
    h = h + r.astype(jnp.float32)                     # dropout == identity
    mean = jnp.mean(h, axis=-1, keepdims=True)
    var = jnp.mean((h - mean) ** 2, axis=-1, keepdims=True)
    y = (h - mean) * lax.rsqrt(var + eps) * gamma.astype(jnp.float32) \
        + beta.astype(jnp.float32)
    return y.astype(hidden_states.dtype)


# ---------------------------------------------------------------------------
if __name__ == "__main__":
    # Small config consistent with the module:
    #   intermediate_size=64, hidden_size=32, layer_norm_eps=1e-5
    B, S = 2, 8
    K = 64          # intermediate_size
    N = 32          # hidden_size
    eps = 1e-5

    key = jax.random.PRNGKey(0)
    k1, k2, k3, k4, k5 = jax.random.split(key, 5)
    hidden_states = jax.random.normal(k1, (B, S, K), jnp.float32)
    input_tensor = jax.random.normal(k2, (B, S, N), jnp.float32)
    # stored as (in, out) == weight.T of the torch nn.Linear (bias=False)
    w_dense = 0.1 * jax.random.normal(k3, (K, N), jnp.float32)
    gamma = 1.0 + 0.1 * jax.random.normal(k4, (N,), jnp.float32)
    beta = 0.1 * jax.random.normal(k5, (N,), jnp.float32)

    out = mctct_output(hidden_states, w_dense, gamma, beta, input_tensor, eps=eps)
    out = jax.block_until_ready(out)

    ref = _reference_forward(hidden_states, w_dense, gamma, beta,
                             input_tensor, eps)
    np.testing.assert_allclose(np.asarray(out), np.asarray(ref),
                               rtol=5e-3, atol=5e-3)
    print("KERNEL_OK")
</pallas_src>

<mosaic_0001>
module attributes {stable_mosaic.version = 11 : i64} {
  func.func @_mctct_output_kernel(%arg0: i32, %arg1: i32, %arg2: memref<16x64xbf16, #tpu.memory_space<vmem>>, %arg3: memref<64x32xbf16, #tpu.memory_space<vmem>>, %arg4: memref<16x32xbf16, #tpu.memory_space<vmem>>, %arg5: memref<1x32xf32, #tpu.memory_space<vmem>>, %arg6: memref<1x32xf32, #tpu.memory_space<vmem>>, %arg7: memref<16x32xf32, #tpu.memory_space<vmem>>) attributes {dimension_semantics = [#tpu.dimension_semantics<parallel>, #tpu.dimension_semantics<arbitrary>], iteration_bounds = array<i64: 1, 1>, scalar_prefetch = 0 : i64, scratch_operands = 0 : i64, tpu.core_type = #tpu.core_type<tc>, window_params = [{transform_indices = @transform_0, window_bounds = array<i64: 16, 64>}, {transform_indices = @transform_1, window_bounds = array<i64: 64, 32>}, {transform_indices = @transform_2, window_bounds = array<i64: 16, 32>}, {pipeline_mode = #tpu.pipeline_mode<synchronous>, transform_indices = @transform_3, window_bounds = array<i64: 1, 32>}, {pipeline_mode = #tpu.pipeline_mode<synchronous>, transform_indices = @transform_4, window_bounds = array<i64: 1, 32>}, {transform_indices = @transform_5, window_bounds = array<i64: 16, 32>}]} {
    %c0_i32 = arith.constant 0 : i32
    %0 = arith.cmpi eq, %arg1, %c0_i32 : i32
    %1 = arith.extui %0 : i1 to i32
    %c0_i32_0 = arith.constant 0 : i32
    %2 = arith.cmpi ne, %1, %c0_i32_0 : i32
    scf.if %2 {
      %cst_10 = arith.constant 0.000000e+00 : f32
      %12 = vector.broadcast %cst_10 : f32 to vector<16x32xf32>
      %c0_11 = arith.constant 0 : index
      %c0_12 = arith.constant 0 : index
      %13 = vector.load %arg7[%c0_11, %c0_12] : memref<16x32xf32, #tpu.memory_space<vmem>>, vector<16x32xf32>
      tpu.vector_store %arg7[%c0_11, %c0_12], %12 {strides = array<i32>} : memref<16x32xf32, #tpu.memory_space<vmem>>, vector<16x32xf32>,
    } else {
    }
    %c0 = arith.constant 0 : index
    %c0_1 = arith.constant 0 : index
    %3 = vector.load %arg7[%c0, %c0_1] : memref<16x32xf32, #tpu.memory_space<vmem>>, vector<16x32xf32>
    %c0_2 = arith.constant 0 : index
    %c0_3 = arith.constant 0 : index
    %4 = vector.load %arg2[%c0_2, %c0_3] : memref<16x64xbf16, #tpu.memory_space<vmem>>, vector<16x64xbf16>
    %c0_4 = arith.constant 0 : index
    %c0_5 = arith.constant 0 : index
    %5 = vector.load %arg3[%c0_4, %c0_5] : memref<64x32xbf16, #tpu.memory_space<vmem>>, vector<64x32xbf16>
    %cst = arith.constant dense<0.000000e+00> : vector<16x32xf32>
    %6 = tpu.matmul %4, %5, %cst {dimension_numbers = #tpu.dot_dimension_numbers<[1], [0], [0], [1], [0, 0, 1, 1], [], []>} : vector<16x64xbf16>, vector<64x32xbf16>, vector<16x32xf32> -> vector<16x32xf32>
    %7 = arith.addf %3, %6 : vector<16x32xf32>
    %c0_6 = arith.constant 0 : index
    %c0_7 = arith.constant 0 : index
    %8 = vector.load %arg7[%c0_6, %c0_7] : memref<16x32xf32, #tpu.memory_space<vmem>>, vector<16x32xf32>
    tpu.vector_store %arg7[%c0_6, %c0_7], %7 {strides = array<i32>} : memref<16x32xf32, #tpu.memory_space<vmem>>, vector<16x32xf32>,
    %c0_i32_8 = arith.constant 0 : i32
    %9 = arith.cmpi eq, %arg1, %c0_i32_8 : i32
    %10 = arith.extui %9 : i1 to i32
    %c0_i32_9 = arith.constant 0 : i32
    %11 = arith.cmpi ne, %10, %c0_i32_9 : i32
    scf.if %11 {
      %c0_10 = arith.constant 0 : index
      %c0_11 = arith.constant 0 : index
      %12 = vector.load %arg7[%c0_10, %c0_11] : memref<16x32xf32, #tpu.memory_space<vmem>>, vector<16x32xf32>
      %c0_12 = arith.constant 0 : index
      %c0_13 = arith.constant 0 : index
      %13 = vector.load %arg4[%c0_12, %c0_13] : memref<16x32xbf16, #tpu.memory_space<vmem>>, vector<16x32xbf16>
      %14 = arith.extf %13 : vector<16x32xbf16> to vector<16x32xf32>
      %15 = arith.addf %12, %14 : vector<16x32xf32>
      %cst_14 = arith.constant dense<0.000000e+00> : vector<16xf32>
      %16 = vector.multi_reduction <add>, %15, %cst_14 [1] : vector<16x32xf32> to vector<16xf32>
      %17 = vector.shape_cast %16 : vector<16xf32> to vector<16x1xf32>
      %cst_15 = arith.constant 3.200000e+01 : f32
      %18 = vector.broadcast %cst_15 : f32 to vector<16x1xf32>
      %19 = arith.divf %17, %18 : vector<16x1xf32>
      %20 = vector.broadcast %19 : vector<16x1xf32> to vector<16x32xf32>
      %21 = arith.subf %15, %20 : vector<16x32xf32>
      %22 = arith.mulf %21, %21 : vector<16x32xf32>
      %cst_16 = arith.constant dense<0.000000e+00> : vector<16xf32>
      %23 = vector.multi_reduction <add>, %22, %cst_16 [1] : vector<16x32xf32> to vector<16xf32>
      %24 = vector.shape_cast %23 : vector<16xf32> to vector<16x1xf32>
      %cst_17 = arith.constant 3.200000e+01 : f32
      %25 = vector.broadcast %cst_17 : f32 to vector<16x1xf32>
      %26 = arith.divf %24, %25 : vector<16x1xf32>
      %cst_18 = arith.constant 9.99999974E-6 : f32
      %27 = vector.broadcast %cst_18 : f32 to vector<16x1xf32>
      %28 = arith.addf %26, %27 : vector<16x1xf32>
      %29 = math.rsqrt %28 : vector<16x1xf32>
      %30 = vector.broadcast %29 : vector<16x1xf32> to vector<16x32xf32>
      %31 = arith.mulf %21, %30 : vector<16x32xf32>
      %c0_19 = arith.constant 0 : index
      %c0_20 = arith.constant 0 : index
      %32 = vector.load %arg5[%c0_19, %c0_20] : memref<1x32xf32, #tpu.memory_space<vmem>>, vector<1x32xf32>
      %33 = vector.broadcast %32 : vector<1x32xf32> to vector<16x32xf32>
      %34 = arith.mulf %31, %33 : vector<16x32xf32>
      %c0_21 = arith.constant 0 : index
      %c0_22 = arith.constant 0 : index
      %35 = vector.load %arg6[%c0_21, %c0_22] : memref<1x32xf32, #tpu.memory_space<vmem>>, vector<1x32xf32>
      %36 = vector.broadcast %35 : vector<1x32xf32> to vector<16x32xf32>
      %37 = arith.addf %34, %36 : vector<16x32xf32>
      %c0_23 = arith.constant 0 : index
      %c0_24 = arith.constant 0 : index
      %38 = vector.load %arg7[%c0_23, %c0_24] : memref<16x32xf32, #tpu.memory_space<vmem>>, vector<16x32xf32>
      tpu.vector_store %arg7[%c0_23, %c0_24], %37 {strides = array<i32>} : memref<16x32xf32, #tpu.memory_space<vmem>>, vector<16x32xf32>,
    } else {
    }
    return
  }
  func.func @transform_0(%arg0: i32, %arg1: i32) -> (i32, i32) {
    %c0_i32 = arith.constant 0 : i32
    return %arg0, %arg1 : i32, i32
  }
  func.func @transform_1(%arg0: i32, %arg1: i32) -> (i32, i32) {
    %c0_i32 = arith.constant 0 : i32
    %c0_i32_0 = arith.constant 0 : i32
    return %arg1, %c0_i32 : i32, i32
  }
  func.func @transform_2(%arg0: i32, %arg1: i32) -> (i32, i32) {
    %c0_i32 = arith.constant 0 : i32
    %c0_i32_0 = arith.constant 0 : i32
    return %arg0, %c0_i32 : i32, i32
  }
  func.func @transform_3(%arg0: i32, %arg1: i32) -> (i32, i32) {
    %c0_i32 = arith.constant 0 : i32
    %c0_i32_0 = arith.constant 0 : i32
    %c0_i32_1 = arith.constant 0 : i32
    return %c0_i32, %c0_i32_0 : i32, i32
  }
  func.func @transform_4(%arg0: i32, %arg1: i32) -> (i32, i32) {
    %c0_i32 = arith.constant 0 : i32
    %c0_i32_0 = arith.constant 0 : i32
    %c0_i32_1 = arith.constant 0 : i32
    return %c0_i32, %c0_i32_0 : i32, i32
  }
  func.func @transform_5(%arg0: i32, %arg1: i32) -> (i32, i32) {
    %c0_i32 = arith.constant 0 : i32
    %c0_i32_0 = arith.constant 0 : i32
    return %arg0, %c0_i32 : i32, i32
  }
}

</mosaic_0001>

<bundles_post_ra>
// kernel: tpu_custom_call.1
= control target key start
LH: loop header
LB: loop body
LE: loop exit
PB: predicated region body
PF: predicated region fallthrough
CT: control target
= control target key end

     0   :  { %v261_v1 = vmov 0.0   ;;  %vm262_vm0 = vmmov 0   ;;  %vm26_vm1 = vcmask 261120   ;;  %s342_s0 = inlined_call_operand.vmem [shape: bf16[16,64], index: 0, kind: input, shape index: {}]   ;;  %s343_s1 = inlined_call_operand.vmem [shape: bf16[64,32], index: 1, kind: input, shape index: {}]   ;;  %s344_s2 = inlined_call_operand.vmem [shape: bf16[16,32], index: 2, kind: input, shape index: {}]   ;;  %s345_s3 = inlined_call_operand.vmem [shape: f32[1,32], index: 3, kind: input, shape index: {}]   ;;  %s346_s4 = inlined_call_operand.vmem [shape: f32[1,32], index: 4, kind: input, shape index: {}]   ;;  %s347_s5 = inlined_call_operand.hbm [shape: f32[16,32], index: 5, kind: output, shape index: {}]  }
   0x1   :  { %v228_v0 = vld [vmem:[%s343_s1] sm:$0xff]   ;;  %211 = vmatprep.subr.bf16.mxu0 %v261_v1  ;;  %v229_v2 = vld [vmem:[%s343_s1 + $0x8] sm:$0xff]   ;;  %219 = vmatprep.mubr.msk.bf16.mxu0 %vm262_vm0, %v261_v1  ;;  %27 = vst.msk [vmem:[#allocation2] sm:$0xff] %vm26_vm1, %v261_v1  ;;  %28 = vst.msk [vmem:[#allocation2 + $0x8] sm:$0xff] %vm26_vm1, %v261_v1 }
   0x2   :  { %212 = vmatpush3.bf16.msra.mxu0 %v228_v0 }
   0x3   :  { %213 = vmatprep.subr.bf16.mxu0 %v261_v1 }
   0x4   :  { %10 = vsyncpa [#allocation3], 0  ;;  %v230_v3 = vld [vmem:[%s343_s1 + $0x10] sm:$0xff]   ;;  %v231_v4 = vld [vmem:[%s343_s1 + $0x18] sm:$0xff]   ;;  %vm70_vm2 = vcmask 523264   ;;  %s263_s6 = smov [#allocation2]  }
   0x5   :  { %v232_v5 = vld [vmem:[%s342_s0] sm:$0xff]   ;;  %s183_s7 = sshll.u32 %s263_s6, 4  ;;  %s184_s7 = int_to_ptr.vmem [resolvable:$true] %s183_s7 }
   0x6   :  { %214 = vmatpush3.bf16.msra.mxu0 %v229_v2  ;;  %v203_v14 = vld [vmem:[%s344_s2] sm:$0xff]   ;;  %s237_s8 = scalar_lea.vmem %s184_s7, 256  ;;  %p242_p1 = scmp.lt.s32.totalorder %s184_s7, %s184_s7 }
   0x7   :  { %215 = vmatprep.subr.bf16.mxu0 %v261_v1  ;;  %v204_v15 = vunpack.c.l.bf16 %v203_v14  ;;  %v205_v16 = vunpack.c.h.bf16 %v203_v14  ;;  %v200_v40 = vld [vmem:[%s345_s3] ss:$0 sm:$0xff]  ;;  %p238_p0 = scmp.ne.s32.totalorder %s184_s7, %s237_s8  ;;  %p243_p2 = scmp.lt.s32.totalorder %s237_s8, %s237_s8 }
   0x8   :  { %v29_v6 = vld [vmem:[#allocation2] sm:$0xff]  ;;  %v30_v8 = vld [vmem:[#allocation2 + $0x8] sm:$0xff] }
   0x9   :  { %v201_v42 = vld [vmem:[%s346_s4] ss:$0 sm:$0xff]  ;;  %p244_p3 = por %p243_p2, %p242_p1 }
   0xa   :  { %216 = vmatpush3.bf16.msra.mxu0 %v230_v3 }
   0xb   :  { %217 = vmatprep.subr.bf16.mxu0 %v261_v1  ;;  %p245_p4 = pnand %p244_p3, %p238_p0 }
   0xe   :  { %218 = vmatpush3.bf16.msra.mxu0 %v231_v4 }
  0x11   :  { %220 = vmatmul.mubr.msk.bf16.vlgmr.msra.gmra.mrb[0].mxu0 %vm70_vm2, %v232_v5 }
  0xe4   :  { %v108_v7 = vpop.f32.mrb[0].mxu0 }
  0xe5   :  { %v115_v9 = vadd.f32 %v108_v7, %v29_v6  ;;  %v221_v10 = vpop.f32.mrb[1].mxu0 }
  0xe6   :  { %v111_v11 = vpop.f32.mrb[2].mxu0 }
  0xe7   :  { %118 = vst.msk [vmem:[#allocation2] sm:$0xff] %vm26_vm1, %v115_v9  ;;  %v116_v12 = vadd.f32 %v111_v11, %v30_v8  ;;  %v222_v13 = vpop.f32.mrb[3].mxu0 }
  0xe9   :  { %119 = vst.msk [vmem:[#allocation2 + $0x8] sm:$0xff] %vm26_vm1, %v116_v12 }
  0xee   :  { %v123_v17 = vld [vmem:[#allocation2] sm:$0xff] }
  0xef   :  { %v129_v18 = vadd.f32 %v204_v15, %v123_v17 }
  0xf0   :  { %v124_v19 = vld [vmem:[#allocation2 + $0x8] sm:$0xff] }
  0xf1   :  { %v131_v20 = vsel %vm26_vm1, %v129_v18, 0.0  ;;  %v130_v21 = vadd.f32 %v205_v16, %v124_v19 }
  0xf2   :  { %132 = vadd.xlane.f32.xlu0 %v131_v20 }
  0xf3   :  { %v134_v22 = vsel %vm26_vm1, %v130_v21, 0.0 }
  0xf6   :  { %135 = vadd.xlane.f32.xlu0 %v134_v22 }
 0x17f   :  { %v133_v23 = vpop.xlane.xlu0 %132 }
 0x180   :  { %v138_v24 = vmul.f32 0.03125, %v133_v23 }
 0x182   :  { %v140_v25 = vsub.f32 %v129_v18, %v138_v24 }
 0x183   :  { %v136_v26 = vpop.xlane.xlu0 %135 }
 0x184   :  { %v139_v27 = vmul.f32 0.03125, %v136_v26  ;;  %v142_v28 = vmul.f32 %v140_v25, %v140_v25 }
 0x186   :  { %v141_v29 = vsub.f32 %v130_v21, %v139_v27  ;;  %v144_v30 = vsel %vm26_vm1, %v142_v28, 0.0 }
 0x187   :  { %145 = vadd.xlane.f32.xlu1 %v144_v30 }
 0x188   :  { %v143_v31 = vmul.f32 %v141_v29, %v141_v29 }
 0x18a   :  { %v147_v32 = vsel %vm26_vm1, %v143_v31, 0.0 }
 0x18b   :  { %148 = vadd.xlane.f32.xlu1 %v147_v32 }
 0x214   :  { %v146_v33 = vpop.xlane.xlu1 %145 }
 0x215   :  { %v150_v34 = vmul.f32 0.03125, %v146_v33 }
 0x217   :  { %v152_v35 = vadd.f32 1e-05, %v150_v34 }
 0x218   :  { %v149_v36 = vpop.xlane.xlu1 %148 }
 0x219   :  { %233 = vrsqrt.f32 %v152_v35  ;;  %v151_v37 = vmul.f32 0.03125, %v149_v36 }
 0x21b   :  { %v153_v38 = vadd.f32 1e-05, %v151_v37 }
 0x21d   :  { %235 = vrsqrt.f32 %v153_v38 }
 0x223   :  { %v234_v39 = vpop.eup %233 }
 0x224   :  { %v156_v41 = vmul.f32 %v234_v39, %v140_v25 }
 0x226   :  { %v165_v43 = vmul.f32 %v200_v40, %v156_v41 }
 0x227   :  { %v236_v44 = vpop.eup %235 }
 0x228   :  { %v157_v45 = vmul.f32 %v236_v44, %v141_v29  ;;  %v174_v46 = vadd.f32 %v201_v42, %v165_v43 }
 0x22a   :  { %v166_v47 = vmul.f32 %v200_v40, %v157_v45  ;;  %176 = vst.msk [vmem:[#allocation2] sm:$0xff] %vm26_vm1, %v174_v46 }
 0x22c   :  { %v175_v48 = vadd.f32 %v201_v42, %v166_v47 }
 0x22e   :  { %177 = vst.msk [vmem:[#allocation2 + $0x8] sm:$0xff] %vm26_vm1, %v175_v48 }
 0x22f   :  { %248 = shalt.err (!%p245_p4)
}
 0x230   :  { %s249_s9 = scalar_lea.hbm %s347_s5, 256 }
 0x231   :  { %p250_p5 = scmp.ne.s32.totalorder %s347_s5, %s249_s9  ;;  %p253_p6 = scmp.lt.u32.totalorder %s249_s9, %s347_s5 }
 0x233   :  { %p255_p7 = pnand %p253_p6, %p250_p5 }
 0x235   :  { %258 = shalt.err (!%p255_p7)
}
 0x236   :  { %s264_s14 = smov 128   ;;  %s265_s15 = smov 8  }
 0x237   :  { %189 = dma.vmem_to_hbm [thread:$0]  %s184_s7, 256, %s347_s5, [#allocation3], %s264_s14, %s264_s14, %s265_s15  }
 0x238   :  { %259 = dma.done.wait [#allocation3], 256  }
 0x239   :  { %260 = vsyncadd [#allocation3], 4294967040 }
 0x23a   :  { %193 = vsyncpa [#allocation3], 1 }

</bundles_post_ra>
